<compile_context>
chip_gen: v7x
topology: tpu7x:2x2x1
jax: 0.10.0
libtpu: 0.0.40
codegen_flags: <defaults>
</compile_context>

<pallas_src>
import functools

import jax
import jax.numpy as jnp
from jax.experimental import pallas as pl
from jax.experimental.pallas import tpu as pltpu

DEFAULT_GAMMA = 2.0
DEFAULT_ALPHA = 0.25


# ----------------------------------------------------------------------------
# kernel bodies
# ----------------------------------------------------------------------------
def _focal_elementwise(x, t, gamma, alpha):
    """Elementwise sigmoid focal loss (numerically stable, single exp)."""
    e = jnp.exp(-jnp.abs(x))                    # exp(-|x|)  (one EUP exp)
    inv = 1.0 / (1.0 + e)
    p = jnp.where(x >= 0, inv, e * inv)         # sigmoid(x)
    pt = (1.0 - p) * t + p * (1.0 - t)
    if gamma == 2.0:
        mod = pt * pt                           # avoid pow -> log+exp on EUP
    else:
        mod = pt ** gamma
    fw = (alpha * t + (1.0 - alpha) * (1.0 - t)) * mod
    # stable BCE-with-logits: max(x,0) - x*t + log1p(exp(-|x|))
    bce = jnp.maximum(x, 0.0) - x * t + jnp.log1p(e)
    return bce * fw


def _map_kernel(gamma, alpha, has_weight, *refs):
    """reduction='none': write the full per-element loss tile."""
    if has_weight:
        pred_ref, tgt_ref, w_ref, out_ref = refs
    else:
        pred_ref, tgt_ref, out_ref = refs
        w_ref = None
    loss = _focal_elementwise(pred_ref[...].astype(jnp.float32),
                              tgt_ref[...].astype(jnp.float32),
                              gamma, alpha)
    if has_weight:
        loss = loss * w_ref[...].astype(jnp.float32)
    out_ref[...] = loss


def _partial_kernel(gamma, alpha, has_weight, *refs):
    """reduction='mean'/'sum': emit only an (8, C) partial sum per tile."""
    if has_weight:
        pred_ref, tgt_ref, w_ref, part_ref = refs
    else:
        pred_ref, tgt_ref, part_ref = refs
        w_ref = None
    loss = _focal_elementwise(pred_ref[...].astype(jnp.float32),
                              tgt_ref[...].astype(jnp.float32),
                              gamma, alpha)
    if has_weight:
        loss = loss * w_ref[...].astype(jnp.float32)
    tn, c = loss.shape                          # static (TILE_N, C), TILE_N % 8 == 0
    # (TILE_N, C) -> (TILE_N//8, 8, C): sublane-group split, layout-preserving.
    # Sum over the leading axis is pure elementwise VPU adds (no XLU reduce).
    part_ref[...] = jnp.sum(loss.reshape(tn // 8, 8, c), axis=0)


# ----------------------------------------------------------------------------
# wrapper
# ----------------------------------------------------------------------------
def _round_up(x, m):
    return ((x + m - 1) // m) * m


def _pick_tile_n(n, c, max_tile_n):
    """Rows per tile: ~1 MiB per f32 input buffer, multiple of 8, <= max_tile_n.

    Keeps (2-3 inputs + output) x 2 pipeline buffers well under the scoped VMEM
    default on every generation (16 MiB v5e, 32 MiB v6e/v7x; v7x has 64 MiB
    physical VMEM total).
    """
    target_bytes = 1 << 20
    t = max(8, min(max_tile_n, target_bytes // max(1, c * 4)))
    t = max(8, (t // 8) * 8)
    return min(t, _round_up(n, 8))


def binary_focal_loss(cls_score, label, weight=None, avg_factor=None,
                      reduction='mean', gamma=DEFAULT_GAMMA,
                      alpha=DEFAULT_ALPHA, loss_weight=1.0, max_tile_n=1024):
    """Matches BinaryFocalLoss.forward (use_sigmoid=True)."""
    assert reduction in ('none', 'mean', 'sum')
    n, c = cls_score.shape
    has_weight = weight is not None

    tile_n = _pick_tile_n(n, c, max_tile_n)
    n_pad = _round_up(n, tile_n)
    num_tiles = n_pad // tile_n

    pred = cls_score.astype(jnp.float32)
    tgt = label.astype(jnp.float32)
    if n_pad != n:
        pad = n_pad - n
        # Padded rows contribute exactly zero loss: logits -> large negative
        # (exp underflows to 0, bce == 0, pt == 0), target/weight -> 0.
        pred = jnp.pad(pred, ((0, pad), (0, 0)), constant_values=-1e4)
        tgt = jnp.pad(tgt, ((0, pad), (0, 0)))

    inputs = [pred, tgt]
    in_specs = [pl.BlockSpec((tile_n, c), lambda i: (i, 0)),
                pl.BlockSpec((tile_n, c), lambda i: (i, 0))]
    if has_weight:
        # TODO(synk): only same-shape (N, C) elementwise weights are supported;
        # broadcastable (N,)-shaped weights would need a wrapper-side expand.
        w = weight.astype(jnp.float32)
        if n_pad != n:
            w = jnp.pad(w, ((0, n_pad - n), (0, 0)))
        inputs.append(w)
        in_specs.append(pl.BlockSpec((tile_n, c), lambda i: (i, 0)))

    compiler_params = pltpu.CompilerParams(dimension_semantics=("parallel",))

    if reduction == 'none':
        kernel = functools.partial(_map_kernel, gamma, alpha, has_weight)
        loss_map = pl.pallas_call(
            kernel,
            out_shape=jax.ShapeDtypeStruct((n_pad, c), jnp.float32),
            grid=(num_tiles,),
            in_specs=in_specs,
            out_specs=pl.BlockSpec((tile_n, c), lambda i: (i, 0)),
            compiler_params=compiler_params,
        )(*inputs)
        return loss_weight * loss_map[:n]

    # mean / sum: no (N, C) writeback -- only per-tile (8, C) partial sums.
    kernel = functools.partial(_partial_kernel, gamma, alpha, has_weight)
    partials = pl.pallas_call(
        kernel,
        out_shape=jax.ShapeDtypeStruct((num_tiles, 8, c), jnp.float32),
        grid=(num_tiles,),
        in_specs=in_specs,
        out_specs=pl.BlockSpec((None, 8, c), lambda i: (i, 0, 0)),
        compiler_params=compiler_params,
    )(*inputs)
    total = jnp.sum(partials)                   # tiny final reduction in JAX

    if reduction == 'sum':
        out = total
    else:  # 'mean'
        denom = avg_factor if avg_factor is not None else (n * c)
        out = total / denom
    return loss_weight * out


class BinaryFocalLoss:
    """Thin stateful wrapper mirroring the PyTorch module's forward."""

    def __init__(self, use_sigmoid=True, gamma=2.0, alpha=0.25,
                 reduction='mean', loss_weight=1.0):
        assert use_sigmoid is True, 'Only sigmoid focal loss supported now.'
        self.gamma = gamma
        self.alpha = alpha
        self.reduction = reduction
        self.loss_weight = loss_weight

    def __call__(self, cls_score, label, weight=None, avg_factor=None,
                 reduction_override=None):
        assert reduction_override in (None, 'none', 'mean', 'sum')
        reduction = reduction_override if reduction_override else self.reduction
        return binary_focal_loss(cls_score, label, weight=weight,
                                 avg_factor=avg_factor, reduction=reduction,
                                 gamma=self.gamma, alpha=self.alpha,
                                 loss_weight=self.loss_weight)


# ----------------------------------------------------------------------------
# reference + test
# ----------------------------------------------------------------------------
def _reference(cls_score, label, weight=None, avg_factor=None,
               reduction='mean', gamma=2.0, alpha=0.25, loss_weight=1.0):
    p = jax.nn.sigmoid(cls_score)
    t = label
    pt = (1 - p) * t + p * (1 - t)
    fw = (alpha * t + (1 - alpha) * (1 - t)) * pt ** gamma
    bce = (jnp.maximum(cls_score, 0.0) - cls_score * t
           + jnp.log1p(jnp.exp(-jnp.abs(cls_score))))
    loss = bce * fw
    if weight is not None:
        loss = loss * weight
    if reduction == 'none':
        return loss_weight * loss
    s = jnp.sum(loss)
    if reduction == 'sum':
        return loss_weight * s
    denom = avg_factor if avg_factor is not None else loss.size
    return loss_weight * s / denom


if __name__ == "__main__":
    key = jax.random.PRNGKey(0)
    k1, k2, k3 = jax.random.split(key, 3)

    # small shapes; max_tile_n=16 forces a 3-tile grid (44 -> 48 padded rows)
    N, C = 44, 128
    cls_score = jax.random.normal(k1, (N, C), dtype=jnp.float32)
    label = (jax.random.uniform(k2, (N, C)) > 0.5).astype(jnp.float32)
    weight = jax.random.uniform(k3, (N, C), dtype=jnp.float32)

    # 1) default 'mean' -> partial-sum kernel (no (N, C) writeback)
    got_mean = jax.block_until_ready(
        binary_focal_loss(cls_score, label, reduction='mean', max_tile_n=16))
    ref_mean = _reference(cls_score, label, reduction='mean')
    assert jnp.allclose(got_mean, ref_mean, rtol=1e-5, atol=1e-6), (got_mean, ref_mean)

    # 2) 'none' -> full loss-map kernel
    got_map = jax.block_until_ready(
        binary_focal_loss(cls_score, label, reduction='none', max_tile_n=16))
    ref_map = _reference(cls_score, label, reduction='none')
    assert got_map.shape == (N, C)
    assert jnp.allclose(got_map, ref_map, rtol=1e-5, atol=1e-5)

    # 3) weighted 'sum' -> weight folded into the kernel
    got_ws = jax.block_until_ready(
        binary_focal_loss(cls_score, label, weight=weight, reduction='sum',
                          max_tile_n=16))
    ref_ws = _reference(cls_score, label, weight=weight, reduction='sum')
    assert jnp.allclose(got_ws, ref_ws, rtol=1e-5, atol=1e-5), (got_ws, ref_ws)

    print("KERNEL_OK")
</pallas_src>

<mosaic_0001>
module attributes {stable_mosaic.version = 11 : i64} {
  func.func @_partial_kernel(%arg0: i32, %arg1: memref<16x128xf32, #tpu.memory_space<vmem>>, %arg2: memref<16x128xf32, #tpu.memory_space<vmem>>, %arg3: memref<1x8x128xf32, #tpu.memory_space<vmem>>) attributes {dimension_semantics = [#tpu.dimension_semantics<parallel>], iteration_bounds = array<i64: 3>, scalar_prefetch = 0 : i64, scratch_operands = 0 : i64, tpu.core_type = #tpu.core_type<tc>, window_params = [{transform_indices = @transform_0, window_bounds = array<i64: 16, 128>}, {transform_indices = @transform_1, window_bounds = array<i64: 16, 128>}, {transform_indices = @transform_2, window_bounds = array<i64: 1, 8, 128>}]} {
    %c0 = arith.constant 0 : index
    %c0_0 = arith.constant 0 : index
    %0 = vector.load %arg1[%c0, %c0_0] : memref<16x128xf32, #tpu.memory_space<vmem>>, vector<16x128xf32>
    %c0_1 = arith.constant 0 : index
    %c0_2 = arith.constant 0 : index
    %1 = vector.load %arg2[%c0_1, %c0_2] : memref<16x128xf32, #tpu.memory_space<vmem>>, vector<16x128xf32>
    %2 = math.absf %0 : vector<16x128xf32>
    %cst = arith.constant 0.000000e+00 : f32
    %3 = vector.broadcast %cst : f32 to vector<16x128xf32>
    %4 = arith.subf %3, %2 : vector<16x128xf32>
    %5 = math.exp %4 : vector<16x128xf32>
    %cst_3 = arith.constant 1.000000e+00 : f32
    %6 = vector.broadcast %cst_3 : f32 to vector<16x128xf32>
    %7 = arith.addf %6, %5 : vector<16x128xf32>
    %cst_4 = arith.constant 1.000000e+00 : f32
    %8 = vector.broadcast %cst_4 : f32 to vector<16x128xf32>
    %9 = arith.divf %8, %7 : vector<16x128xf32>
    %cst_5 = arith.constant 0.000000e+00 : f32
    %10 = vector.broadcast %cst_5 : f32 to vector<16x128xf32>
    %11 = arith.cmpf oge, %0, %10 : vector<16x128xf32>
    %12 = arith.mulf %5, %9 : vector<16x128xf32>
    %13 = arith.select %11, %9, %12 : vector<16x128xi1>, vector<16x128xf32>
    %cst_6 = arith.constant 1.000000e+00 : f32
    %14 = vector.broadcast %cst_6 : f32 to vector<16x128xf32>
    %15 = arith.subf %14, %13 : vector<16x128xf32>
    %16 = arith.mulf %15, %1 : vector<16x128xf32>
    %cst_7 = arith.constant 1.000000e+00 : f32
    %17 = vector.broadcast %cst_7 : f32 to vector<16x128xf32>
    %18 = arith.subf %17, %1 : vector<16x128xf32>
    %19 = arith.mulf %13, %18 : vector<16x128xf32>
    %20 = arith.addf %16, %19 : vector<16x128xf32>
    %21 = arith.mulf %20, %20 : vector<16x128xf32>
    %cst_8 = arith.constant 2.500000e-01 : f32
    %22 = vector.broadcast %cst_8 : f32 to vector<16x128xf32>
    %23 = arith.mulf %22, %1 : vector<16x128xf32>
    %cst_9 = arith.constant 1.000000e+00 : f32
    %24 = vector.broadcast %cst_9 : f32 to vector<16x128xf32>
    %25 = arith.subf %24, %1 : vector<16x128xf32>
    %cst_10 = arith.constant 7.500000e-01 : f32
    %26 = vector.broadcast %cst_10 : f32 to vector<16x128xf32>
    %27 = arith.mulf %26, %25 : vector<16x128xf32>
    %28 = arith.addf %23, %27 : vector<16x128xf32>
    %29 = arith.mulf %28, %21 : vector<16x128xf32>
    %cst_11 = arith.constant 0.000000e+00 : f32
    %30 = vector.broadcast %cst_11 : f32 to vector<16x128xf32>
    %31 = arith.maximumf %0, %30 : vector<16x128xf32>
    %32 = arith.mulf %0, %1 : vector<16x128xf32>
    %33 = arith.subf %31, %32 : vector<16x128xf32>
    %34 = math.log1p %5 : vector<16x128xf32>
    %35 = arith.addf %33, %34 : vector<16x128xf32>
    %36 = arith.mulf %35, %29 : vector<16x128xf32>
    %37 = vector.shape_cast %36 : vector<16x128xf32> to vector<2x8x128xf32>
    %cst_12 = arith.constant dense<0.000000e+00> : vector<8x128xf32>
    %38 = vector.multi_reduction <add>, %37, %cst_12 [0] : vector<2x8x128xf32> to vector<8x128xf32>
    %c0_13 = arith.constant 0 : index
    %c0_14 = arith.constant 0 : index
    %c0_15 = arith.constant 0 : index
    %39 = vector.load %arg3[%c0_13, %c0_14, %c0_15] : memref<1x8x128xf32, #tpu.memory_space<vmem>>, vector<1x8x128xf32>
    %40 = vector.shape_cast %39 : vector<1x8x128xf32> to vector<8x128xf32>
    %41 = vector.shape_cast %38 : vector<8x128xf32> to vector<1x8x128xf32>
    tpu.vector_store %arg3[%c0_13, %c0_14, %c0_15], %41 {strides = array<i32>} : memref<1x8x128xf32, #tpu.memory_space<vmem>>, vector<1x8x128xf32>,
    return
  }
  func.func @transform_0(%arg0: i32) -> (i32, i32) {
    %c0_i32 = arith.constant 0 : i32
    %c0_i32_0 = arith.constant 0 : i32
    return %arg0, %c0_i32 : i32, i32
  }
  func.func @transform_1(%arg0: i32) -> (i32, i32) {
    %c0_i32 = arith.constant 0 : i32
    %c0_i32_0 = arith.constant 0 : i32
    return %arg0, %c0_i32 : i32, i32
  }
  func.func @transform_2(%arg0: i32) -> (i32, i32, i32) {
    %c0_i32 = arith.constant 0 : i32
    %c0_i32_0 = arith.constant 0 : i32
    %c0_i32_1 = arith.constant 0 : i32
    return %arg0, %c0_i32, %c0_i32_0 : i32, i32, i32
  }
}

</mosaic_0001>

<bundles_post_ra>
// kernel: tpu_custom_call.1
= control target key start
LH: loop header
LB: loop body
LE: loop exit
PB: predicated region body
PF: predicated region fallthrough
CT: control target
= control target key end

     0   :  { %7 = vsyncpa [#allocation3], 0  ;;  %s849_s0 = inlined_call_operand.hbm [shape: f32[48,128], index: 0, kind: input, shape index: {}]   ;;  %s850_s1 = inlined_call_operand.hbm [shape: f32[48,128], index: 1, kind: input, shape index: {}]   ;;  %s851_s2 = inlined_call_operand.hbm [shape: f32[3,8,128], index: 2, kind: output, shape index: {}]  }
   0x1   :  { %9 = vsyncpa [#allocation3 + $0x1], 0 }
   0x2   :  { %10 = vsyncpa [#allocation6], 0 }
   0x3   :  { %12 = vsyncpa [#allocation6 + $0x1], 0 }
   0x4   :  { %13 = vsyncpa [#allocation4], 0 }
   0x5   :  { %15 = vsyncpa [#allocation4 + $0x1], 0  ;;  %s621_s9 = smov 0   ;;  %s623_s10 = smov 0  }
   0x6   :  { %s625_s11 = smov 0   ;;  %s627_s12 = smov 0  }
   0x7 LB: > { %s642_s13 = sadd.s32 4294967295, %s599_s12   ;;  %s385_s14 = sadd.s32 4294967294, %s599_s12   ;;  %s599_s12 = sphi %s627_s12, %s868_s12   ;;  %s595_s11 = sphi %s625_s11, %s867_s11   ;;  %s591_s10 = sphi %s623_s10, %s866_s10   ;;  %s587_s9 = sphi %s621_s9, %s865_s9  }
   0x8   : > { %s646_s15 = sadd.s32 1, %s599_s12   ;;  %s28_s16 = sadd.s32 1, %s595_s11 }
   0x9   : > { %s25_s17 = ssub.s32 %s599_s12, %s646_s15  ;;  %p35_p0 = scmp.ne.s32.totalorder %s595_s11, %s591_s10 }
   0xa   : > { %p26_p1 = scmp.eq.s32.totalorder %s25_s17, 0  ;;  %p36_p2 = scmp.eq.s32.totalorder %s599_s12, 0 }
   0xb   : > { %p41_p3 = scmp.ne.s32.totalorder %s591_s10, %s587_s9  ;;  %p42_p4 = scmp.eq.s32.totalorder %s642_s13, 0 }
   0xc   : > { %s658_s18 = scalar_select %p26_p1, %s595_s11, %s28_s16  }
   0xd   : > { %p660_p5 = por %p36_p2, %p35_p0  ;;  %p664_p6 = por %p42_p4, %p41_p3 }
   0xe   : > { %p91_p7 = scmp.eq.s32.totalorder %s642_s13, 2  ;;  %p97_p8 = scmp.eq.s32.totalorder %s385_s14, 2 }
   0xf   : > { %s855_s20 = scalar_select %p664_p6, 1, 0 }
  0x10   : > { %p421_p9 = scmp.lt.s32.totalorder %s599_s12, 3  ;;  %p670_p10 = por %p91_p7, %p35_p0 }
  0x11   : > { %p674_p11 = por %p97_p8, %p41_p3  ;;  %s679_s23 = sand.u32 1, %s595_s11  }
  0x12   : > { %s856_s21 = scalar_select %p670_p10, 1, 0 }
  0x13   : > { %s857_s22 = scalar_select %p674_p11, 1, 0 }
  0x14   : > { %s402_s24 = sshll.u32 %s599_s12, 8  ;;  %s388_s25 = sshll.u32 %s679_s23, 4 }
  0x15   : > { %s688_s28 = scalar_lea.hbm %s849_s0, %s402_s24  ;;  %s121_s29 = scalar_lea.vmem [#allocation2], %s388_s25 }
  0x16   : > { %s128_s30 = sshll.u32 %s121_s29, 4  ;;  %p694_p12 = pnand %p421_p9, %p660_p5  ;;  %s698_s30 = int_to_ptr.vmem [resolvable:$true] %s128_s30 }
  0x17   : > { %s118_s4 = scalar_lea.sflag [#allocation3], %s679_s23  ;;  %s469_s5 = scalar_lea.hbm %s688_s28, 256 }
  0x18   : > { %p470_p13 = scmp.ne.s32.totalorder %s688_s28, %s469_s5  ;;  %p471_p0 = pneg %p694_p12 }
  0x19   : > { %s474_s8 = scalar_lea.hbm %s849_s0, 768  ;;  %p475_p3 = scmp.lt.u32.totalorder %s688_s28, %s849_s0 }
  0x1a   : > { %p472_p1 = pnand %p471_p0, %p470_p13  ;;  %p476_p4 = scmp.lt.u32.totalorder %s474_s8, %s469_s5 }
  0x1b   : > { %p478_p7 = scmp.lt.u32.totalorder %s469_s5, %s688_s28 }
  0x1c   : > { %p473_p2 = pneg %p472_p1  ;;  %p477_p5 = por %p476_p4, %p475_p3 }
  0x1e   : > { %p479_p8 = por %p478_p7, %p477_p5 }
  0x20   : > { %p480_p9 = pnand %p479_p8, %p473_p2 }
  0x22   : > { %483 = shalt.err (!%p480_p9)
}
  0x23   : > { %s484_s17 = scalar_lea.vmem %s698_s30, 256  ;;  %s601_s19 = smov [#allocation2]  }
  0x24   : > { %p485_p13 = scmp.ne.s32.totalorder %s698_s30, %s484_s17  ;;  %s489_s26 = sshll.u32 %s601_s19, 4  ;;  %s490_s26 = int_to_ptr.vmem [resolvable:$false] %s489_s26 }
  0x25   : > { %s491_s27 = scalar_lea.vmem %s490_s26, 512  ;;  %p492_p10 = scmp.lt.s32.totalorder %s698_s30, %s490_s26 }
  0x26   : > { %p487_p1 = pnand %p485_p13, %p471_p0  ;;  %p493_p3 = scmp.lt.s32.totalorder %s491_s27, %s484_s17 }
  0x28   : > { %p488_p11 = pneg %p487_p1  ;;  %p494_p4 = por %p493_p3, %p492_p10 }
  0x2a   : > { %p495_p5 = pnand %p494_p4, %p488_p11 }
  0x2c   : > { %498 = shalt.err (!%p495_p5)
}
  0x2d   : > { %s602_s29 = smov 128   ;;  %s603_s5 = smov 8  }
  0x2e   : > { %413 = dma.hbm_to_vmem [thread:$0]  (!%p694_p12), %s688_s28, 256, %s698_s30, %s118_s4, %s602_s29, %s602_s29, %s603_s5  }
  0x2f   : > { %p394_p10 = scmp.ge.s32.totalorder %s599_s12, 1  ;;  %p157_p11 = scmp.lt.s32.totalorder %s599_s12, 4 }
  0x30   : > { %s742_s14 = scalar_lea.hbm %s850_s1, %s402_s24  ;;  %s142_s16 = scalar_lea.vmem [#allocation5], %s388_s25 }
  0x31   : > { %p733_p2 = pnand %p394_p10, %p157_p11  ;;  %s149_s17 = sshll.u32 %s142_s16, 4  ;;  %s746_s17 = int_to_ptr.vmem [resolvable:$true] %s149_s17 }
  0x32   : > { %s139_s28 = scalar_lea.sflag [#allocation6], %s679_s23  ;;  %s499_s30 = scalar_lea.hbm %s742_s14, 256 }
  0x33   : > { %p500_p7 = scmp.ne.s32.totalorder %s742_s14, %s499_s30  ;;  %s504_s24 = scalar_lea.hbm %s850_s1, 768 }
  0x34   : > { %p505_p13 = scmp.lt.u32.totalorder %s742_s14, %s850_s1  ;;  %p506_p1 = scmp.lt.u32.totalorder %s504_s24, %s499_s30 }
  0x35   : > { %p502_p8 = pnand %p500_p7, %p471_p0  ;;  %p508_p4 = scmp.lt.u32.totalorder %s499_s30, %s742_s14 }
  0x36   : > { %p507_p3 = por %p506_p1, %p505_p13 }
  0x37   : > { %p503_p9 = pneg %p502_p8 }
  0x38   : > { %p509_p5 = por %p508_p4, %p507_p3 }
  0x3a   : > { %p510_p10 = pnand %p509_p5, %p503_p9 }
  0x3c   : > { %513 = shalt.err (!%p510_p10)
}
  0x3d   : > { %s514_s25 = scalar_lea.vmem %s746_s17, 256  ;;  %s604_s7 = smov [#allocation5]  }
  0x3e   : > { %p515_p11 = scmp.ne.s32.totalorder %s746_s17, %s514_s25  ;;  %s519_s8 = sshll.u32 %s604_s7, 4  ;;  %s520_s8 = int_to_ptr.vmem [resolvable:$false] %s519_s8 }
  0x3f   : > { %s521_s16 = scalar_lea.vmem %s520_s8, 512  ;;  %p522_p6 = scmp.lt.s32.totalorder %s746_s17, %s520_s8 }
  0x40   : > { %p517_p7 = pnand %p515_p11, %p471_p0  ;;  %p523_p13 = scmp.lt.s32.totalorder %s521_s16, %s514_s25 }
  0x42   : > { %p518_p8 = pneg %p517_p7  ;;  %p524_p1 = por %p523_p13, %p522_p6 }
  0x44   : > { %p525_p3 = pnand %p524_p1, %p518_p8 }
  0x46   : > { %528 = shalt.err (!%p525_p3)
}
  0x47   : > { %416 = dma.hbm_to_vmem [thread:$0]  (!%p694_p12), %s742_s14, 256, %s746_s17, %s139_s28, %s602_s29, %s602_s29, %s603_s5  }
  0x48   : > { %161 = sbr.rel (%p733_p2) target bundleno = 145 (0x91), region = 28  ;;  %s780_s30 = sand.u32 (!%p733_p2), 1, %s591_s10  }
  0x49   : > { %s395_s4 = sshll.u32 (!%p733_p2), %s780_s30, 4  ;;  %s164_s19 = scalar_lea.sflag (!%p733_p2), [#allocation3], %s780_s30 }
  0x4a   : > { %s167_s3 = scalar_lea.vmem (!%p733_p2), [#allocation2], %s395_s4  ;;  %p860_p6 = scmp.ne.s32.totalorder (!%p733_p2), %s855_s20, 0 }
  0x4f   : > { %574 = dma.done.wait (%p860_p6), %s164_s19, 256  }
  0x50   : > { %576 = vsyncadd (%p860_p6), %s164_s19, 4294967040  ;;  %s173_s23 = scalar_lea.sflag [#allocation6], %s780_s30  ;;  %s176_s29 = scalar_lea.vmem [#allocation5], %s395_s4 }
  0x51   : > { %578 = dma.done.wait (%p860_p6), %s173_s23, 256  }
  0x52   : > { %580 = vsyncadd (%p860_p6), %s173_s23, 4294967040  ;;  %v204_v0 = vld [vmem:[%s167_s3] sm:$0xff]  ;;  %v205_v1 = vld [vmem:[%s167_s3 + $0x8] sm:$0xff]  ;;  %s397_s20 = sshll.u32 %s780_s30, 3  ;;  %s399_s14 = sshll.u32 %s642_s13, 7 }
  0x53   : > { %v208_v2 = vand.u32 2147483647, %v204_v0  ;;  %v209_v3 = vand.u32 2147483647, %v205_v1  ;;  %v206_v14 = vld [vmem:[%s176_s29] sm:$0xff]  ;;  %v207_v15 = vld [vmem:[%s176_s29 + $0x8] sm:$0xff]  ;;  %s808_s24 = scalar_lea.hbm %s851_s2, %s399_s14 }
  0x54   : > { %vm222_vm0 = vcmp.ge.f32.partialorder %v204_v0, 0.0  ;;  %v232_v17 = vsub.f32 1.0, %v206_v14  ;;  %v250_v18 = vmul.f32 %v206_v14, %v204_v0  ;;  %vm223_vm1 = vcmp.ge.f32.partialorder %v205_v1, 0.0  ;;  %s201_s5 = scalar_lea.vmem [#allocation7], %s397_s20  ;;  %s279_s26 = scalar_lea.sflag [#allocation4], %s780_s30 }
  0x55   : > { %v210_v4 = vsub.f32 0.0, %v208_v2  ;;  %v211_v5 = vsub.f32 0.0, %v209_v3  ;;  %v233_v22 = vsub.f32 1.0, %v207_v15  ;;  %v240_v23 = vmul.f32 0.25, %v206_v14  ;;  %s292_s6 = sshll.u32 %s201_s5, 4  ;;  %p863_p0 = scmp.ne.s32.totalorder %s856_s21, 0  ;;  %s803_s6 = int_to_ptr.vmem [resolvable:$true] %s292_s6 }
  0x56   : > { %v241_v24 = vmul.f32 0.25, %v207_v15  ;;  %v242_v27 = vmul.f32 0.75, %v232_v17  ;;  %v248_v28 = vmax.f32 %v204_v0, 0.0  ;;  %v249_v32 = vmax.f32 %v205_v1, 0.0  ;;  %s529_s27 = scalar_lea.vmem %s803_s6, 128  ;;  %s605_s13 = smov [#allocation7]  }
  0x57   : > { %v212_v6 = vmul.f32 1.442695, %v210_v4  ;;  %v214_v7 = vmul.f32 1.442695, %v211_v5  ;;  %v251_v33 = vmul.f32 %v207_v15, %v205_v1  ;;  %v243_v46 = vmul.f32 0.75, %v233_v22  ;;  %p530_p12 = scmp.ne.s32.totalorder %s803_s6, %s529_s27  ;;  %s533_s25 = sshll.u32 %s605_s13, 4  ;;  %s534_s25 = int_to_ptr.vmem [resolvable:$false] %s533_s25 }
  0x58   : > { %v252_v48 = vsub.f32 %v248_v28, %v250_v18  ;;  %v244_v53 = vadd.f32 %v242_v27, %v240_v23  ;;  %s535_s7 = scalar_lea.vmem %s534_s25, 256  ;;  %p536_p4 = scmp.lt.s32.totalorder %s803_s6, %s534_s25 }
  0x59   : > { %457 = vpow2.f32 %v212_v6  ;;  %v253_v50 = vsub.f32 %v249_v32, %v251_v33  ;;  %v245_v56 = vadd.f32 %v243_v46, %v241_v24  ;;  %p531_p2 = pnand %p530_p12, %p863_p0  ;;  %p537_p5 = scmp.lt.s32.totalorder %s535_s7, %s529_s27 }
  0x5a   : > { %459 = vpow2.f32 %v214_v7 }
  0x5b   : > { %p532_p9 = pneg %p531_p2  ;;  %p538_p10 = por %p537_p5, %p536_p4 }
  0x5d   : > { %p539_p11 = pnand %p538_p10, %p532_p9 }
  0x63   : > { %v458_v8 = vpop.eup %457 }
  0x64   : > { %v460_v9 = vpop.eup %459  ;;  %v216_v10 = vadd.f32 1.0, %v458_v8  ;;  %v257_v12 = vmul.f32 -0.5, %v458_v8  ;;  %v260_v16 = vand.u32 2147483647, %v458_v8 }
  0x65   : > { %v217_v11 = vadd.f32 1.0, %v460_v9  ;;  %v266_v13 = vmul.f32 -0.5, %v460_v9  ;;  %v269_v29 = vand.u32 2147483647, %v460_v9 }
  0x66   : > { %461 = vrcp.f32 %v216_v10  ;;  %v258_v19 = vadd.f32 1.0, %v257_v12  ;;  %vm793_vm2 = vcmp.lt.f32.partialorder %v260_v16, 0.0004427343 }
  0x67   : > { %463 = vrcp.f32 %v217_v11  ;;  %v267_v20 = vadd.f32 1.0, %v266_v13  ;;  %vm270_vm3 = vcmp.lt.f32.partialorder %v269_v29, 0.0004427343 }
  0x68   : > { %465 = vlog2.f32 %v216_v10  ;;  %v259_v38 = vmul.f32 %v458_v8, %v258_v19 }
  0x69   : > { %467 = vlog2.f32 %v217_v11  ;;  %v268_v39 = vmul.f32 %v460_v9, %v267_v20 }
  0x70   : > { %v462_v21 = vpop.eup %461 }
  0x71   : > { %v464_v25 = vpop.eup %463  ;;  %v224_v26 = vmul.f32 %v462_v21, %v458_v8 }
  0x72   : > { %v466_v30 = vpop.eup %465  ;;  %v225_v31 = vmul.f32 %v464_v25, %v460_v9 }
  0x73   : > { %v468_v35 = vpop.eup %467  ;;  %v226_v36 = vsel %vm222_vm0, %v462_v21, %v224_v26  ;;  %v256_v37 = vmul.f32 0.6931472, %v466_v30 }
  0x74   : > { %v227_v40 = vsel %vm223_vm1, %v464_v25, %v225_v31  ;;  %v228_v41 = vsub.f32 1.0, %v226_v36  ;;  %v234_v42 = vmul.f32 %v232_v17, %v226_v36  ;;  %v265_v43 = vmul.f32 0.6931472, %v468_v35 }
  0x75   : > { %v229_v44 = vsub.f32 1.0, %v227_v40  ;;  %v235_v45 = vmul.f32 %v233_v22, %v227_v40  ;;  %v262_v51 = vsel %vm793_vm2, %v259_v38, %v256_v37 }
  0x76   : > { %v230_v47 = vmul.f32 %v228_v41, %v206_v14  ;;  %v271_v54 = vsel %vm270_vm3, %v268_v39, %v265_v43  ;;  %v272_v58 = vadd.f32 %v262_v51, %v252_v48 }
  0x77   : > { %v231_v49 = vmul.f32 %v229_v44, %v207_v15  ;;  %v273_v60 = vadd.f32 %v271_v54, %v253_v50 }
  0x78   : > { %v236_v52 = vadd.f32 %v234_v42, %v230_v47 }
  0x79   : > { %v237_v55 = vadd.f32 %v235_v45, %v231_v49 }
  0x7a   : > { %v238_v57 = vmul.f32 %v236_v52, %v236_v52 }
  0x7b   : > { %v239_v59 = vmul.f32 %v237_v55, %v237_v55 }
  0x7c   : > { %v246_v61 = vmul.f32 %v244_v53, %v238_v57 }
  0x7d   : > { %v247_v62 = vmul.f32 %v245_v56, %v239_v59 }
  0x7e   : > { %v274_v63 = vmul.f32 %v272_v58, %v246_v61 }
  0x7f   : > { %v275_v0 = vmul.f32 %v273_v60, %v247_v62 }
  0x81   : > { %v276_v1 = vadd.f32 %v275_v0, %v274_v63 }
  0x83   : > { %277 = vst [vmem:[%s201_s5] sm:$0xff] %v276_v1 }
  0x84   : > { %542 = shalt.err (!%p539_p11)
}
  0x85   : > { %s543_s8 = scalar_lea.hbm %s808_s24, 128  ;;  %s547_s4 = scalar_lea.hbm %s851_s2, 384 }
  0x86   : > { %p544_p7 = scmp.ne.s32.totalorder %s808_s24, %s543_s8  ;;  %p548_p1 = scmp.lt.u32.totalorder %s808_s24, %s851_s2 }
  0x87   : > { %p549_p3 = scmp.lt.u32.totalorder %s547_s4, %s543_s8  ;;  %p551_p12 = scmp.lt.u32.totalorder %s543_s8, %s808_s24 }
  0x88   : > { %p545_p8 = pnand %p544_p7, %p863_p0 }
  0x89   : > { %p550_p6 = por %p549_p3, %p548_p1 }
  0x8a   : > { %p546_p13 = pneg %p545_p8 }
  0x8b   : > { %p552_p2 = por %p551_p12, %p550_p6 }
  0x8d   : > { %p553_p9 = pnand %p552_p2, %p546_p13 }
  0x8f   : > { %556 = shalt.err (!%p553_p9)
}
  0x90   : > { %408 = dma.vmem_to_hbm [thread:$0]  (%p863_p0), %s803_s6, 128, %s808_s24, %s279_s26  }
  0x91 PF: > { %p422_p4 = scmp.ge.s32.totalorder %s599_s12, 2  ;;  %s304_s23 = sand.u32 1, %s587_s9  }
  0x92   : > { %p864_p5 = scmp.ne.s32.totalorder %s857_s22, 0  ;;  %s305_s29 = scalar_lea.sflag [#allocation4], %s304_s23 }
  0x94   : > { %p418_p10 = pnand %p422_p4, %p864_p5 }
  0x96   : > { %582 = dma.done.wait (!%p418_p10), %s305_s29, 128  }
  0x97   : > { %584 = vsyncadd (!%p418_p10), %s305_s29, 4294967168  ;;  %p18_p11 = scmp.ge.s32.totalorder %s646_s15, 5   ;;  %s865_s9 = smov %s591_s10 }
  0x98   : > { %s866_s10 = smov %s595_s11  ;;  %s867_s11 = smov %s658_s18 }
  0x99   : > { %s868_s12 = smov %s646_s15  ;;  %20 = sbr.rel (!%p18_p11) target bundleno = 7 (0x7), region = 86 }
  0xa0   :  { %310 = vsyncpa [#allocation3], 1 }
  0xa1   :  { %312 = vsyncpa [#allocation3 + $0x1], 1 }
  0xa2   :  { %313 = vsyncpa [#allocation6], 1 }
  0xa3   :  { %315 = vsyncpa [#allocation6 + $0x1], 1 }
  0xa4   :  { %316 = vsyncpa [#allocation4], 1 }
  0xa5   :  { %318 = vsyncpa [#allocation4 + $0x1], 1 }

</bundles_post_ra>
